<compile_context>
chip_gen: v7x
topology: tpu7x:2x2x1
jax: 0.10.0
libtpu: 0.0.40
codegen_flags: <defaults>
</compile_context>

<pallas_src>
import jax
import jax.numpy as jnp
from jax import lax
from jax.experimental import pallas as pl
from jax.experimental.pallas import tpu as pltpu


def _round_up(x, m):
    return (x + m - 1) // m * m


def _pad_gate_columns(w, h, hp):
    """(..., 3h) -> (..., 3hp): zero-pad each of the 3 gate blocks to hp lanes."""
    pad = [(0, 0)] * (w.ndim - 1) + [(0, hp - h)]
    return jnp.concatenate(
        [jnp.pad(w[..., g * h:(g + 1) * h], pad) for g in range(3)], axis=-1)


def _augru_recurrence_kernel(gx_ref, attn_ref, mask_ref, wh_ref, bh_ref,
                             out_ref, outh_ref, h_scratch):
    """One (batch_block, time_chunk) tile of the AUGRU recurrence.

    Grid = (batch_blocks, time_chunks); the time axis is sequential ("arbitrary"),
    the batch axis is independent ("parallel"). h_scratch persists across time chunks.
    """
    c = pl.program_id(1)

    @pl.when(c == 0)
    def _():
        h_scratch[...] = jnp.zeros_like(h_scratch)

    t_chunk = gx_ref.shape[0]          # static
    hp = outh_ref.shape[1]             # padded hidden size (multiple of 128)

    wh = wh_ref[...]                   # (Hp, 3Hp) -- grid-invariant, stays in VMEM
    bh = bh_ref[...]                   # (1, 3Hp)  f32

    def step(i, carry):
        del carry
        h = h_scratch[...]             # (Bb, Hp) f32
        gx = gx_ref[i]                 # (Bb, 3Hp) precomputed x-projection + bias
        a = attn_ref[i]                # (Bb, 1)
        m = mask_ref[i]                # (Bb, 1)  1.0 for active rows else 0.0

        gh = jnp.dot(h.astype(wh.dtype), wh,
                     preferred_element_type=jnp.float32) + bh

        i_u, i_r, i_n = gx[:, 0:hp], gx[:, hp:2 * hp], gx[:, 2 * hp:3 * hp]
        h_u, h_r, h_n = gh[:, 0:hp], gh[:, hp:2 * hp], gh[:, 2 * hp:3 * hp]

        update_gate = jax.nn.sigmoid(i_u + h_u) * a      # attentional update gate
        reset_gate = jax.nn.sigmoid(i_r + h_r)
        new_gate = jnp.tanh(i_n + reset_gate * h_n)
        h_new = h + update_gate * (new_gate - h)

        # PackedSequence semantics: only active rows advance; inactive rows keep h.
        h_kept = h + m * (h_new - h)
        h_scratch[...] = h_kept
        out_ref[i] = (m * h_new).astype(out_ref.dtype)
        return 0

    lax.fori_loop(0, t_chunk, step, 0, unroll=True)

    @pl.when(c == pl.num_programs(1) - 1)
    def _():
        # output_h[b] == hidden state at the last step where b was active, which is
        # exactly the masked-update accumulator at the end (batch_sizes non-increasing).
        outh_ref[...] = h_scratch[...].astype(outh_ref.dtype)


def dynamic_augru(x, attn, batch_sizes, wx, bx, wh, bh, *,
                  time_chunk=8, batch_block=None, matmul_dtype=jnp.float32):
    """AUGRU forward.

    x: (T, B, Din), attn: (T, B, 1), batch_sizes: (T,) int32 non-increasing.
    wx: (Din, 3H), bx: (1, 3H), wh: (H, 3H), bh: (1, 3H).
    matmul_dtype: set to jnp.bfloat16 on v6e/v7x for ~2x MXU throughput on the
                  recurrent h@Wh matmul (accumulation stays f32).
    """
    T, B, Din = x.shape
    H = wh.shape[0]
    assert wx.shape == (Din, 3 * H) and wh.shape == (H, 3 * H)
    assert bx.shape == (1, 3 * H) and bh.shape == (1, 3 * H)
    # output_h-at-last-step correctness relies on PackedSequence (non-increasing) order.
    assert bool(jnp.all(batch_sizes[1:] <= batch_sizes[:-1])), \
        "batch_sizes must be non-increasing (PackedSequence convention)."

    Hp = _round_up(H, 128)                 # lane-align every gate slice & the output
    Bp = _round_up(B, 8)                   # sublane alignment
    Tc = max(1, int(time_chunk))
    Tp = _round_up(T, Tc)
    Bb = Bp if batch_block is None else int(batch_block)
    assert Bb % 8 == 0 and Bp % Bb == 0, "batch_block must be a multiple of 8 dividing padded B"

    f32 = jnp.float32

    # ---- Hoisted input projection: one big matmul off the serial path ----
    wx_p = _pad_gate_columns(wx, H, Hp).astype(f32)                   # (Din, 3Hp)
    bx_p = _pad_gate_columns(bx, H, Hp).astype(f32)                   # (1, 3Hp)
    gate_x = jnp.einsum('tbd,dg->tbg', x.astype(f32), wx_p,
                        preferred_element_type=f32) + bx_p            # (T, B, 3Hp)

    # ---- Pad recurrent weights per gate so slices start on 128-lane boundaries ----
    wh_p = _pad_gate_columns(jnp.pad(wh, ((0, Hp - H), (0, 0))),
                             H, Hp).astype(matmul_dtype)              # (Hp, 3Hp)
    bh_p = _pad_gate_columns(bh, H, Hp).astype(f32)                   # (1, 3Hp)

    # ---- Pad time / batch and precompute the activity mask ----
    gate_x = jnp.pad(gate_x, ((0, Tp - T), (0, Bp - B), (0, 0)))
    attn_p = jnp.pad(attn.astype(f32), ((0, Tp - T), (0, Bp - B), (0, 0)))
    bs_p = jnp.pad(batch_sizes.astype(jnp.int32), (0, Tp - T))
    mask = (jnp.arange(Bp, dtype=jnp.int32)[None, :] < bs_p[:, None])
    mask = mask.astype(f32)[..., None]                                # (Tp, Bp, 1)

    n_b = Bp // Bb
    n_c = Tp // Tc

    grid_spec = pltpu.PrefetchScalarGridSpec(
        num_scalar_prefetch=0,
        grid=(n_b, n_c),
        in_specs=[
            pl.BlockSpec((Tc, Bb, 3 * Hp), lambda b, c: (c, b, 0)),   # gate_x chunk
            pl.BlockSpec((Tc, Bb, 1), lambda b, c: (c, b, 0)),        # attn chunk
            pl.BlockSpec((Tc, Bb, 1), lambda b, c: (c, b, 0)),        # activity mask chunk
            pl.BlockSpec((Hp, 3 * Hp), lambda b, c: (0, 0)),          # Wh (grid-invariant)
            pl.BlockSpec((1, 3 * Hp), lambda b, c: (0, 0)),           # bh (grid-invariant)
        ],
        out_specs=[
            pl.BlockSpec((Tc, Bb, Hp), lambda b, c: (c, b, 0)),       # outputs (per chunk)
            pl.BlockSpec((Bb, Hp), lambda b, c: (b, 0)),              # output_h (resident over c)
        ],
        scratch_shapes=[pltpu.VMEM((Bb, Hp), jnp.float32)],           # hidden-state carry
    )

    outputs_p, output_h_p = pl.pallas_call(
        _augru_recurrence_kernel,
        grid_spec=grid_spec,
        out_shape=(
            jax.ShapeDtypeStruct((Tp, Bp, Hp), jnp.float32),
            jax.ShapeDtypeStruct((Bp, Hp), jnp.float32),
        ),
        compiler_params=pltpu.CompilerParams(
            dimension_semantics=("parallel", "arbitrary"),
            # Small shapes fit the default scoped-VMEM budget. When scaling H or
            # time_chunk, set vmem_limit_bytes so Wh + 2x(gate_x,attn,mask,out)
            # chunks + h_scratch stay within budget (64 MiB physical on v7x,
            # 16 MiB default scoped on v5e).
        ),
    )(gate_x, attn_p, mask, wh_p, bh_p)

    # Strip padding back to the user-visible shapes.
    return outputs_p[:T, :B, :H], output_h_p[:B, :H]


def _reference_augru(x, attn, batch_sizes, wx, bx, wh, bh):
    """Pure-JAX reference mirroring the PyTorch PackedSequence loop."""
    T, B, _ = x.shape
    H = wh.shape[0]
    h = jnp.zeros((B, H), jnp.float32)
    outs = jnp.zeros((T, B, H), jnp.float32)
    for t in range(T):
        bs = int(batch_sizes[t])
        gx = x[t] @ wx + bx
        gh = h @ wh + bh
        i_u, i_r, i_n = gx[:, :H], gx[:, H:2 * H], gx[:, 2 * H:]
        h_u, h_r, h_n = gh[:, :H], gh[:, H:2 * H], gh[:, 2 * H:]
        u = jax.nn.sigmoid(i_u + h_u) * attn[t]
        r = jax.nn.sigmoid(i_r + h_r)
        n = jnp.tanh(i_n + r * h_n)
        h_new = h + u * (n - h)
        mask = (jnp.arange(B) < bs)[:, None]
        h = jnp.where(mask, h_new, h)
        outs = outs.at[t].set(jnp.where(mask, h_new, 0.0))
    return outs, h


if __name__ == "__main__":
    key = jax.random.PRNGKey(0)
    T, B, D_IN, H = 6, 8, 16, 32

    # Sequence lengths sorted descending (PackedSequence convention) -> batch_sizes.
    lengths = jnp.array([6, 5, 5, 4, 3, 3, 2, 1], dtype=jnp.int32)
    batch_sizes = jnp.sum(lengths[None, :] > jnp.arange(T)[:, None], axis=1).astype(jnp.int32)

    k1, k2, k3, k4, k5, k6 = jax.random.split(key, 6)
    x = jax.random.normal(k1, (T, B, D_IN), jnp.float32)
    attn = jax.nn.sigmoid(jax.random.normal(k2, (T, B, 1), jnp.float32))

    # Deterministic parameter init (Linear(input, 3H) and Linear(H, 3H), with bias).
    wx = 0.1 * jax.random.normal(k3, (D_IN, 3 * H), jnp.float32)
    bx = 0.1 * jax.random.normal(k4, (1, 3 * H), jnp.float32)
    wh = 0.1 * jax.random.normal(k5, (H, 3 * H), jnp.float32)
    bh = 0.1 * jax.random.normal(k6, (1, 3 * H), jnp.float32)

    ref_out, ref_h = _reference_augru(x, attn, batch_sizes, wx, bx, wh, bh)

    # time_chunk=4 exercises the cross-chunk hidden-state carry; time_chunk=8 covers
    # the single-chunk path.
    for tc in (4, 8):
        outputs, output_h = dynamic_augru(x, attn, batch_sizes, wx, bx, wh, bh,
                                          time_chunk=tc)
        jax.block_until_ready((outputs, output_h))
        assert jnp.allclose(outputs, ref_out, atol=1e-5, rtol=1e-5), f"outputs mismatch (Tc={tc})"
        assert jnp.allclose(output_h, ref_h, atol=1e-5, rtol=1e-5), f"output_h mismatch (Tc={tc})"

    # TODO(synk): unsorted_indices permutation of output_h (PackedSequence bookkeeping)
    # is identity here; apply a plain-JAX gather if non-trivial ordering is needed.
    print("KERNEL_OK")
</pallas_src>

<mosaic_0001>
module attributes {stable_mosaic.version = 11 : i64} {
  func.func @_augru_recurrence_kernel(%arg0: i32, %arg1: i32, %arg2: memref<4x8x384xf32, #tpu.memory_space<vmem>>, %arg3: memref<4x8x1xf32, #tpu.memory_space<vmem>>, %arg4: memref<4x8x1xf32, #tpu.memory_space<vmem>>, %arg5: memref<128x384xf32, #tpu.memory_space<vmem>>, %arg6: memref<1x384xf32, #tpu.memory_space<vmem>>, %arg7: memref<4x8x128xf32, #tpu.memory_space<vmem>>, %arg8: memref<8x128xf32, #tpu.memory_space<vmem>>, %arg9: memref<8x128xf32, #tpu.memory_space<vmem>>) attributes {dimension_semantics = [#tpu.dimension_semantics<parallel>, #tpu.dimension_semantics<arbitrary>], iteration_bounds = array<i64: 1, 2>, scalar_prefetch = 0 : i64, scratch_operands = 1 : i64, tpu.core_type = #tpu.core_type<tc>, window_params = [{transform_indices = @transform_0, window_bounds = array<i64: 4, 8, 384>}, {transform_indices = @transform_1, window_bounds = array<i64: 4, 8, 1>}, {transform_indices = @transform_2, window_bounds = array<i64: 4, 8, 1>}, {pipeline_mode = #tpu.pipeline_mode<synchronous>, transform_indices = @transform_3, window_bounds = array<i64: 128, 384>}, {pipeline_mode = #tpu.pipeline_mode<synchronous>, transform_indices = @transform_4, window_bounds = array<i64: 1, 384>}, {transform_indices = @transform_5, window_bounds = array<i64: 4, 8, 128>}, {transform_indices = @transform_6, window_bounds = array<i64: 8, 128>}]} {
    %c0_i32 = arith.constant 0 : i32
    %0 = arith.cmpi eq, %arg1, %c0_i32 : i32
    %1 = arith.extui %0 : i1 to i32
    %c0_i32_0 = arith.constant 0 : i32
    %2 = arith.cmpi ne, %1, %c0_i32_0 : i32
    scf.if %2 {
      %cst_66 = arith.constant 0.000000e+00 : f32
      %208 = vector.broadcast %cst_66 : f32 to vector<8x128xf32>
      %c0_67 = arith.constant 0 : index
      %c0_68 = arith.constant 0 : index
      %209 = vector.load %arg9[%c0_67, %c0_68] : memref<8x128xf32, #tpu.memory_space<vmem>>, vector<8x128xf32>
      tpu.vector_store %arg9[%c0_67, %c0_68], %208 {strides = array<i32>} : memref<8x128xf32, #tpu.memory_space<vmem>>, vector<8x128xf32>,
    } else {
    }
    %c0 = arith.constant 0 : index
    %c0_1 = arith.constant 0 : index
    %3 = vector.load %arg5[%c0, %c0_1] : memref<128x384xf32, #tpu.memory_space<vmem>>, vector<128x384xf32>
    %c0_2 = arith.constant 0 : index
    %c0_3 = arith.constant 0 : index
    %4 = vector.load %arg6[%c0_2, %c0_3] : memref<1x384xf32, #tpu.memory_space<vmem>>, vector<1x384xf32>
    %c0_i32_4 = arith.constant 0 : i32
    %c0_5 = arith.constant 0 : index
    %c0_6 = arith.constant 0 : index
    %5 = vector.load %arg9[%c0_5, %c0_6] : memref<8x128xf32, #tpu.memory_space<vmem>>, vector<8x128xf32>
    %6 = arith.index_cast %c0_i32_4 : i32 to index
    %c0_7 = arith.constant 0 : index
    %c0_8 = arith.constant 0 : index
    %7 = vector.load %arg2[%6, %c0_7, %c0_8] : memref<4x8x384xf32, #tpu.memory_space<vmem>>, vector<1x8x384xf32>
    %8 = vector.shape_cast %7 : vector<1x8x384xf32> to vector<8x384xf32>
    %9 = arith.index_cast %c0_i32_4 : i32 to index
    %c0_9 = arith.constant 0 : index
    %c0_10 = arith.constant 0 : index
    %10 = vector.load %arg3[%9, %c0_9, %c0_10] : memref<4x8x1xf32, #tpu.memory_space<vmem>>, vector<1x8x1xf32>
    %11 = vector.shape_cast %10 : vector<1x8x1xf32> to vector<8x1xf32>
    %12 = arith.index_cast %c0_i32_4 : i32 to index
    %c0_11 = arith.constant 0 : index
    %c0_12 = arith.constant 0 : index
    %13 = vector.load %arg4[%12, %c0_11, %c0_12] : memref<4x8x1xf32, #tpu.memory_space<vmem>>, vector<1x8x1xf32>
    %14 = vector.shape_cast %13 : vector<1x8x1xf32> to vector<8x1xf32>
    %cst = arith.constant dense<0.000000e+00> : vector<8x384xf32>
    %15 = tpu.matmul %5, %3, %cst {dimension_numbers = #tpu.dot_dimension_numbers<[1], [0], [0], [1], [0, 0, 1, 1], [], []>} : vector<8x128xf32>, vector<128x384xf32>, vector<8x384xf32> -> vector<8x384xf32>
    %16 = vector.broadcast %4 : vector<1x384xf32> to vector<8x384xf32>
    %17 = arith.addf %15, %16 : vector<8x384xf32>
    %18 = vector.extract_strided_slice %8 {offsets = [0, 0], sizes = [8, 128], strides = [1, 1]} : vector<8x384xf32> to vector<8x128xf32>
    %19 = vector.extract_strided_slice %8 {offsets = [0, 128], sizes = [8, 128], strides = [1, 1]} : vector<8x384xf32> to vector<8x128xf32>
    %20 = vector.extract_strided_slice %8 {offsets = [0, 256], sizes = [8, 128], strides = [1, 1]} : vector<8x384xf32> to vector<8x128xf32>
    %21 = vector.extract_strided_slice %17 {offsets = [0, 0], sizes = [8, 128], strides = [1, 1]} : vector<8x384xf32> to vector<8x128xf32>
    %22 = vector.extract_strided_slice %17 {offsets = [0, 128], sizes = [8, 128], strides = [1, 1]} : vector<8x384xf32> to vector<8x128xf32>
    %23 = vector.extract_strided_slice %17 {offsets = [0, 256], sizes = [8, 128], strides = [1, 1]} : vector<8x384xf32> to vector<8x128xf32>
    %24 = arith.addf %18, %21 : vector<8x128xf32>
    %25 = arith.negf %24 : vector<8x128xf32>
    %26 = math.exp %25 : vector<8x128xf32>
    %cst_13 = arith.constant 1.000000e+00 : f32
    %27 = vector.broadcast %cst_13 : f32 to vector<8x128xf32>
    %28 = arith.addf %27, %26 : vector<8x128xf32>
    %29 = arith.divf %27, %28 : vector<8x128xf32>
    %30 = vector.broadcast %11 : vector<8x1xf32> to vector<8x128xf32>
    %31 = arith.mulf %29, %30 : vector<8x128xf32>
    %32 = arith.addf %19, %22 : vector<8x128xf32>
    %33 = arith.negf %32 : vector<8x128xf32>
    %34 = math.exp %33 : vector<8x128xf32>
    %cst_14 = arith.constant 1.000000e+00 : f32
    %35 = vector.broadcast %cst_14 : f32 to vector<8x128xf32>
    %36 = arith.addf %35, %34 : vector<8x128xf32>
    %37 = arith.divf %35, %36 : vector<8x128xf32>
    %38 = arith.mulf %37, %23 : vector<8x128xf32>
    %39 = arith.addf %20, %38 : vector<8x128xf32>
    %40 = math.tanh %39 : vector<8x128xf32>
    %41 = arith.subf %40, %5 : vector<8x128xf32>
    %42 = arith.mulf %31, %41 : vector<8x128xf32>
    %43 = arith.addf %5, %42 : vector<8x128xf32>
    %44 = arith.subf %43, %5 : vector<8x128xf32>
    %45 = vector.broadcast %14 : vector<8x1xf32> to vector<8x128xf32>
    %46 = arith.mulf %45, %44 : vector<8x128xf32>
    %47 = arith.addf %5, %46 : vector<8x128xf32>
    %c0_15 = arith.constant 0 : index
    %c0_16 = arith.constant 0 : index
    %48 = vector.load %arg9[%c0_15, %c0_16] : memref<8x128xf32, #tpu.memory_space<vmem>>, vector<8x128xf32>
    tpu.vector_store %arg9[%c0_15, %c0_16], %47 {strides = array<i32>} : memref<8x128xf32, #tpu.memory_space<vmem>>, vector<8x128xf32>,
    %49 = vector.broadcast %14 : vector<8x1xf32> to vector<8x128xf32>
    %50 = arith.mulf %49, %43 : vector<8x128xf32>
    %51 = arith.index_cast %c0_i32_4 : i32 to index
    %c0_17 = arith.constant 0 : index
    %c0_18 = arith.constant 0 : index
    %52 = vector.load %arg7[%51, %c0_17, %c0_18] : memref<4x8x128xf32, #tpu.memory_space<vmem>>, vector<1x8x128xf32>
    %53 = vector.shape_cast %52 : vector<1x8x128xf32> to vector<8x128xf32>
    %54 = vector.shape_cast %50 : vector<8x128xf32> to vector<1x8x128xf32>
    tpu.vector_store %arg7[%51, %c0_17, %c0_18], %54 {strides = array<i32>} : memref<4x8x128xf32, #tpu.memory_space<vmem>>, vector<1x8x128xf32>,
    %c1_i32 = arith.constant 1 : i32
    %c0_19 = arith.constant 0 : index
    %c0_20 = arith.constant 0 : index
    %55 = vector.load %arg9[%c0_19, %c0_20] : memref<8x128xf32, #tpu.memory_space<vmem>>, vector<8x128xf32>
    %56 = arith.index_cast %c1_i32 : i32 to index
    %c0_21 = arith.constant 0 : index
    %c0_22 = arith.constant 0 : index
    %57 = vector.load %arg2[%56, %c0_21, %c0_22] : memref<4x8x384xf32, #tpu.memory_space<vmem>>, vector<1x8x384xf32>
    %58 = vector.shape_cast %57 : vector<1x8x384xf32> to vector<8x384xf32>
    %59 = arith.index_cast %c1_i32 : i32 to index
    %c0_23 = arith.constant 0 : index
    %c0_24 = arith.constant 0 : index
    %60 = vector.load %arg3[%59, %c0_23, %c0_24] : memref<4x8x1xf32, #tpu.memory_space<vmem>>, vector<1x8x1xf32>
    %61 = vector.shape_cast %60 : vector<1x8x1xf32> to vector<8x1xf32>
    %62 = arith.index_cast %c1_i32 : i32 to index
    %c0_25 = arith.constant 0 : index
    %c0_26 = arith.constant 0 : index
    %63 = vector.load %arg4[%62, %c0_25, %c0_26] : memref<4x8x1xf32, #tpu.memory_space<vmem>>, vector<1x8x1xf32>
    %64 = vector.shape_cast %63 : vector<1x8x1xf32> to vector<8x1xf32>
    %cst_27 = arith.constant dense<0.000000e+00> : vector<8x384xf32>
    %65 = tpu.matmul %55, %3, %cst_27 {dimension_numbers = #tpu.dot_dimension_numbers<[1], [0], [0], [1], [0, 0, 1, 1], [], []>} : vector<8x128xf32>, vector<128x384xf32>, vector<8x384xf32> -> vector<8x384xf32>
    %66 = vector.broadcast %4 : vector<1x384xf32> to vector<8x384xf32>
    %67 = arith.addf %65, %66 : vector<8x384xf32>
    %68 = vector.extract_strided_slice %58 {offsets = [0, 0], sizes = [8, 128], strides = [1, 1]} : vector<8x384xf32> to vector<8x128xf32>
    %69 = vector.extract_strided_slice %58 {offsets = [0, 128], sizes = [8, 128], strides = [1, 1]} : vector<8x384xf32> to vector<8x128xf32>
    %70 = vector.extract_strided_slice %58 {offsets = [0, 256], sizes = [8, 128], strides = [1, 1]} : vector<8x384xf32> to vector<8x128xf32>
    %71 = vector.extract_strided_slice %67 {offsets = [0, 0], sizes = [8, 128], strides = [1, 1]} : vector<8x384xf32> to vector<8x128xf32>
    %72 = vector.extract_strided_slice %67 {offsets = [0, 128], sizes = [8, 128], strides = [1, 1]} : vector<8x384xf32> to vector<8x128xf32>
    %73 = vector.extract_strided_slice %67 {offsets = [0, 256], sizes = [8, 128], strides = [1, 1]} : vector<8x384xf32> to vector<8x128xf32>
    %74 = arith.addf %68, %71 : vector<8x128xf32>
    %75 = arith.negf %74 : vector<8x128xf32>
    %76 = math.exp %75 : vector<8x128xf32>
    %cst_28 = arith.constant 1.000000e+00 : f32
    %77 = vector.broadcast %cst_28 : f32 to vector<8x128xf32>
    %78 = arith.addf %77, %76 : vector<8x128xf32>
    %79 = arith.divf %77, %78 : vector<8x128xf32>
    %80 = vector.broadcast %61 : vector<8x1xf32> to vector<8x128xf32>
    %81 = arith.mulf %79, %80 : vector<8x128xf32>
    %82 = arith.addf %69, %72 : vector<8x128xf32>
    %83 = arith.negf %82 : vector<8x128xf32>
    %84 = math.exp %83 : vector<8x128xf32>
    %cst_29 = arith.constant 1.000000e+00 : f32
    %85 = vector.broadcast %cst_29 : f32 to vector<8x128xf32>
    %86 = arith.addf %85, %84 : vector<8x128xf32>
    %87 = arith.divf %85, %86 : vector<8x128xf32>
    %88 = arith.mulf %87, %73 : vector<8x128xf32>
    %89 = arith.addf %70, %88 : vector<8x128xf32>
    %90 = math.tanh %89 : vector<8x128xf32>
    %91 = arith.subf %90, %55 : vector<8x128xf32>
    %92 = arith.mulf %81, %91 : vector<8x128xf32>
    %93 = arith.addf %55, %92 : vector<8x128xf32>
    %94 = arith.subf %93, %55 : vector<8x128xf32>
    %95 = vector.broadcast %64 : vector<8x1xf32> to vector<8x128xf32>
    %96 = arith.mulf %95, %94 : vector<8x128xf32>
    %97 = arith.addf %55, %96 : vector<8x128xf32>
    %c0_30 = arith.constant 0 : index
    %c0_31 = arith.constant 0 : index
    %98 = vector.load %arg9[%c0_30, %c0_31] : memref<8x128xf32, #tpu.memory_space<vmem>>, vector<8x128xf32>
    tpu.vector_store %arg9[%c0_30, %c0_31], %97 {strides = array<i32>} : memref<8x128xf32, #tpu.memory_space<vmem>>, vector<8x128xf32>,
    %99 = vector.broadcast %64 : vector<8x1xf32> to vector<8x128xf32>
    %100 = arith.mulf %99, %93 : vector<8x128xf32>
    %101 = arith.index_cast %c1_i32 : i32 to index
    %c0_32 = arith.constant 0 : index
    %c0_33 = arith.constant 0 : index
    %102 = vector.load %arg7[%101, %c0_32, %c0_33] : memref<4x8x128xf32, #tpu.memory_space<vmem>>, vector<1x8x128xf32>
    %103 = vector.shape_cast %102 : vector<1x8x128xf32> to vector<8x128xf32>
    %104 = vector.shape_cast %100 : vector<8x128xf32> to vector<1x8x128xf32>
    tpu.vector_store %arg7[%101, %c0_32, %c0_33], %104 {strides = array<i32>} : memref<4x8x128xf32, #tpu.memory_space<vmem>>, vector<1x8x128xf32>,
    %c2_i32 = arith.constant 2 : i32
    %c0_34 = arith.constant 0 : index
    %c0_35 = arith.constant 0 : index
    %105 = vector.load %arg9[%c0_34, %c0_35] : memref<8x128xf32, #tpu.memory_space<vmem>>, vector<8x128xf32>
    %106 = arith.index_cast %c2_i32 : i32 to index
    %c0_36 = arith.constant 0 : index
    %c0_37 = arith.constant 0 : index
    %107 = vector.load %arg2[%106, %c0_36, %c0_37] : memref<4x8x384xf32, #tpu.memory_space<vmem>>, vector<1x8x384xf32>
    %108 = vector.shape_cast %107 : vector<1x8x384xf32> to vector<8x384xf32>
    %109 = arith.index_cast %c2_i32 : i32 to index
    %c0_38 = arith.constant 0 : index
    %c0_39 = arith.constant 0 : index
    %110 = vector.load %arg3[%109, %c0_38, %c0_39] : memref<4x8x1xf32, #tpu.memory_space<vmem>>, vector<1x8x1xf32>
    %111 = vector.shape_cast %110 : vector<1x8x1xf32> to vector<8x1xf32>
    %112 = arith.index_cast %c2_i32 : i32 to index
    %c0_40 = arith.constant 0 : index
    %c0_41 = arith.constant 0 : index
    %113 = vector.load %arg4[%112, %c0_40, %c0_41] : memref<4x8x1xf32, #tpu.memory_space<vmem>>, vector<1x8x1xf32>
    %114 = vector.shape_cast %113 : vector<1x8x1xf32> to vector<8x1xf32>
    %cst_42 = arith.constant dense<0.000000e+00> : vector<8x384xf32>
    %115 = tpu.matmul %105, %3, %cst_42 {dimension_numbers = #tpu.dot_dimension_numbers<[1], [0], [0], [1], [0, 0, 1, 1], [], []>} : vector<8x128xf32>, vector<128x384xf32>, vector<8x384xf32> -> vector<8x384xf32>
    %116 = vector.broadcast %4 : vector<1x384xf32> to vector<8x384xf32>
    %117 = arith.addf %115, %116 : vector<8x384xf32>
    %118 = vector.extract_strided_slice %108 {offsets = [0, 0], sizes = [8, 128], strides = [1, 1]} : vector<8x384xf32> to vector<8x128xf32>
    %119 = vector.extract_strided_slice %108 {offsets = [0, 128], sizes = [8, 128], strides = [1, 1]} : vector<8x384xf32> to vector<8x128xf32>
    %120 = vector.extract_strided_slice %108 {offsets = [0, 256], sizes = [8, 128], strides = [1, 1]} : vector<8x384xf32> to vector<8x128xf32>
    %121 = vector.extract_strided_slice %117 {offsets = [0, 0], sizes = [8, 128], strides = [1, 1]} : vector<8x384xf32> to vector<8x128xf32>
    %122 = vector.extract_strided_slice %117 {offsets = [0, 128], sizes = [8, 128], strides = [1, 1]} : vector<8x384xf32> to vector<8x128xf32>
    %123 = vector.extract_strided_slice %117 {offsets = [0, 256], sizes = [8, 128], strides = [1, 1]} : vector<8x384xf32> to vector<8x128xf32>
    %124 = arith.addf %118, %121 : vector<8x128xf32>
    %125 = arith.negf %124 : vector<8x128xf32>
    %126 = math.exp %125 : vector<8x128xf32>
    %cst_43 = arith.constant 1.000000e+00 : f32
    %127 = vector.broadcast %cst_43 : f32 to vector<8x128xf32>
    %128 = arith.addf %127, %126 : vector<8x128xf32>
    %129 = arith.divf %127, %128 : vector<8x128xf32>
    %130 = vector.broadcast %111 : vector<8x1xf32> to vector<8x128xf32>
    %131 = arith.mulf %129, %130 : vector<8x128xf32>
    %132 = arith.addf %119, %122 : vector<8x128xf32>
    %133 = arith.negf %132 : vector<8x128xf32>
    %134 = math.exp %133 : vector<8x128xf32>
    %cst_44 = arith.constant 1.000000e+00 : f32
    %135 = vector.broadcast %cst_44 : f32 to vector<8x128xf32>
    %136 = arith.addf %135, %134 : vector<8x128xf32>
    %137 = arith.divf %135, %136 : vector<8x128xf32>
    %138 = arith.mulf %137, %123 : vector<8x128xf32>
    %139 = arith.addf %120, %138 : vector<8x128xf32>
    %140 = math.tanh %139 : vector<8x128xf32>
    %141 = arith.subf %140, %105 : vector<8x128xf32>
    %142 = arith.mulf %131, %141 : vector<8x128xf32>
    %143 = arith.addf %105, %142 : vector<8x128xf32>
    %144 = arith.subf %143, %105 : vector<8x128xf32>
    %145 = vector.broadcast %114 : vector<8x1xf32> to vector<8x128xf32>
    %146 = arith.mulf %145, %144 : vector<8x128xf32>
    %147 = arith.addf %105, %146 : vector<8x128xf32>
    %c0_45 = arith.constant 0 : index
    %c0_46 = arith.constant 0 : index
    %148 = vector.load %arg9[%c0_45, %c0_46] : memref<8x128xf32, #tpu.memory_space<vmem>>, vector<8x128xf32>
    tpu.vector_store %arg9[%c0_45, %c0_46], %147 {strides = array<i32>} : memref<8x128xf32, #tpu.memory_space<vmem>>, vector<8x128xf32>,
    %149 = vector.broadcast %114 : vector<8x1xf32> to vector<8x128xf32>
    %150 = arith.mulf %149, %143 : vector<8x128xf32>
    %151 = arith.index_cast %c2_i32 : i32 to index
    %c0_47 = arith.constant 0 : index
    %c0_48 = arith.constant 0 : index
    %152 = vector.load %arg7[%151, %c0_47, %c0_48] : memref<4x8x128xf32, #tpu.memory_space<vmem>>, vector<1x8x128xf32>
    %153 = vector.shape_cast %152 : vector<1x8x128xf32> to vector<8x128xf32>
    %154 = vector.shape_cast %150 : vector<8x128xf32> to vector<1x8x128xf32>
    tpu.vector_store %arg7[%151, %c0_47, %c0_48], %154 {strides = array<i32>} : memref<4x8x128xf32, #tpu.memory_space<vmem>>, vector<1x8x128xf32>,
    %c3_i32 = arith.constant 3 : i32
    %c0_49 = arith.constant 0 : index
    %c0_50 = arith.constant 0 : index
    %155 = vector.load %arg9[%c0_49, %c0_50] : memref<8x128xf32, #tpu.memory_space<vmem>>, vector<8x128xf32>
    %156 = arith.index_cast %c3_i32 : i32 to index
    %c0_51 = arith.constant 0 : index
    %c0_52 = arith.constant 0 : index
    %157 = vector.load %arg2[%156, %c0_51, %c0_52] : memref<4x8x384xf32, #tpu.memory_space<vmem>>, vector<1x8x384xf32>
    %158 = vector.shape_cast %157 : vector<1x8x384xf32> to vector<8x384xf32>
    %159 = arith.index_cast %c3_i32 : i32 to index
    %c0_53 = arith.constant 0 : index
    %c0_54 = arith.constant 0 : index
    %160 = vector.load %arg3[%159, %c0_53, %c0_54] : memref<4x8x1xf32, #tpu.memory_space<vmem>>, vector<1x8x1xf32>
    %161 = vector.shape_cast %160 : vector<1x8x1xf32> to vector<8x1xf32>
    %162 = arith.index_cast %c3_i32 : i32 to index
    %c0_55 = arith.constant 0 : index
    %c0_56 = arith.constant 0 : index
    %163 = vector.load %arg4[%162, %c0_55, %c0_56] : memref<4x8x1xf32, #tpu.memory_space<vmem>>, vector<1x8x1xf32>
    %164 = vector.shape_cast %163 : vector<1x8x1xf32> to vector<8x1xf32>
    %cst_57 = arith.constant dense<0.000000e+00> : vector<8x384xf32>
    %165 = tpu.matmul %155, %3, %cst_57 {dimension_numbers = #tpu.dot_dimension_numbers<[1], [0], [0], [1], [0, 0, 1, 1], [], []>} : vector<8x128xf32>, vector<128x384xf32>, vector<8x384xf32> -> vector<8x384xf32>
    %166 = vector.broadcast %4 : vector<1x384xf32> to vector<8x384xf32>
    %167 = arith.addf %165, %166 : vector<8x384xf32>
    %168 = vector.extract_strided_slice %158 {offsets = [0, 0], sizes = [8, 128], strides = [1, 1]} : vector<8x384xf32> to vector<8x128xf32>
    %169 = vector.extract_strided_slice %158 {offsets = [0, 128], sizes = [8, 128], strides = [1, 1]} : vector<8x384xf32> to vector<8x128xf32>
    %170 = vector.extract_strided_slice %158 {offsets = [0, 256], sizes = [8, 128], strides = [1, 1]} : vector<8x384xf32> to vector<8x128xf32>
    %171 = vector.extract_strided_slice %167 {offsets = [0, 0], sizes = [8, 128], strides = [1, 1]} : vector<8x384xf32> to vector<8x128xf32>
    %172 = vector.extract_strided_slice %167 {offsets = [0, 128], sizes = [8, 128], strides = [1, 1]} : vector<8x384xf32> to vector<8x128xf32>
    %173 = vector.extract_strided_slice %167 {offsets = [0, 256], sizes = [8, 128], strides = [1, 1]} : vector<8x384xf32> to vector<8x128xf32>
    %174 = arith.addf %168, %171 : vector<8x128xf32>
    %175 = arith.negf %174 : vector<8x128xf32>
    %176 = math.exp %175 : vector<8x128xf32>
    %cst_58 = arith.constant 1.000000e+00 : f32
    %177 = vector.broadcast %cst_58 : f32 to vector<8x128xf32>
    %178 = arith.addf %177, %176 : vector<8x128xf32>
    %179 = arith.divf %177, %178 : vector<8x128xf32>
    %180 = vector.broadcast %161 : vector<8x1xf32> to vector<8x128xf32>
    %181 = arith.mulf %179, %180 : vector<8x128xf32>
    %182 = arith.addf %169, %172 : vector<8x128xf32>
    %183 = arith.negf %182 : vector<8x128xf32>
    %184 = math.exp %183 : vector<8x128xf32>
    %cst_59 = arith.constant 1.000000e+00 : f32
    %185 = vector.broadcast %cst_59 : f32 to vector<8x128xf32>
    %186 = arith.addf %185, %184 : vector<8x128xf32>
    %187 = arith.divf %185, %186 : vector<8x128xf32>
    %188 = arith.mulf %187, %173 : vector<8x128xf32>
    %189 = arith.addf %170, %188 : vector<8x128xf32>
    %190 = math.tanh %189 : vector<8x128xf32>
    %191 = arith.subf %190, %155 : vector<8x128xf32>
    %192 = arith.mulf %181, %191 : vector<8x128xf32>
    %193 = arith.addf %155, %192 : vector<8x128xf32>
    %194 = arith.subf %193, %155 : vector<8x128xf32>
    %195 = vector.broadcast %164 : vector<8x1xf32> to vector<8x128xf32>
    %196 = arith.mulf %195, %194 : vector<8x128xf32>
    %197 = arith.addf %155, %196 : vector<8x128xf32>
    %c0_60 = arith.constant 0 : index
    %c0_61 = arith.constant 0 : index
    %198 = vector.load %arg9[%c0_60, %c0_61] : memref<8x128xf32, #tpu.memory_space<vmem>>, vector<8x128xf32>
    tpu.vector_store %arg9[%c0_60, %c0_61], %197 {strides = array<i32>} : memref<8x128xf32, #tpu.memory_space<vmem>>, vector<8x128xf32>,
    %199 = vector.broadcast %164 : vector<8x1xf32> to vector<8x128xf32>
    %200 = arith.mulf %199, %193 : vector<8x128xf32>
    %201 = arith.index_cast %c3_i32 : i32 to index
    %c0_62 = arith.constant 0 : index
    %c0_63 = arith.constant 0 : index
    %202 = vector.load %arg7[%201, %c0_62, %c0_63] : memref<4x8x128xf32, #tpu.memory_space<vmem>>, vector<1x8x128xf32>
    %203 = vector.shape_cast %202 : vector<1x8x128xf32> to vector<8x128xf32>
    %204 = vector.shape_cast %200 : vector<8x128xf32> to vector<1x8x128xf32>
    tpu.vector_store %arg7[%201, %c0_62, %c0_63], %204 {strides = array<i32>} : memref<4x8x128xf32, #tpu.memory_space<vmem>>, vector<1x8x128xf32>,
    %c4_i32 = arith.constant 4 : i32
    %c1_i32_64 = arith.constant 1 : i32
    %205 = arith.cmpi eq, %arg1, %c1_i32_64 : i32
    %206 = arith.extui %205 : i1 to i32
    %c0_i32_65 = arith.constant 0 : i32
    %207 = arith.cmpi ne, %206, %c0_i32_65 : i32
    scf.if %207 {
      %c0_66 = arith.constant 0 : index
      %c0_67 = arith.constant 0 : index
      %208 = vector.load %arg9[%c0_66, %c0_67] : memref<8x128xf32, #tpu.memory_space<vmem>>, vector<8x128xf32>
      %c0_68 = arith.constant 0 : index
      %c0_69 = arith.constant 0 : index
      %209 = vector.load %arg8[%c0_68, %c0_69] : memref<8x128xf32, #tpu.memory_space<vmem>>, vector<8x128xf32>
      tpu.vector_store %arg8[%c0_68, %c0_69], %208 {strides = array<i32>} : memref<8x128xf32, #tpu.memory_space<vmem>>, vector<8x128xf32>,
    } else {
    }
    return
  }
  func.func @transform_0(%arg0: i32, %arg1: i32) -> (i32, i32, i32) {
    %c0_i32 = arith.constant 0 : i32
    %c0_i32_0 = arith.constant 0 : i32
    return %arg1, %arg0, %c0_i32 : i32, i32, i32
  }
  func.func @transform_1(%arg0: i32, %arg1: i32) -> (i32, i32, i32) {
    %c0_i32 = arith.constant 0 : i32
    %c0_i32_0 = arith.constant 0 : i32
    return %arg1, %arg0, %c0_i32 : i32, i32, i32
  }
  func.func @transform_2(%arg0: i32, %arg1: i32) -> (i32, i32, i32) {
    %c0_i32 = arith.constant 0 : i32
    %c0_i32_0 = arith.constant 0 : i32
    return %arg1, %arg0, %c0_i32 : i32, i32, i32
  }
  func.func @transform_3(%arg0: i32, %arg1: i32) -> (i32, i32) {
    %c0_i32 = arith.constant 0 : i32
    %c0_i32_0 = arith.constant 0 : i32
    %c0_i32_1 = arith.constant 0 : i32
    return %c0_i32, %c0_i32_0 : i32, i32
  }
  func.func @transform_4(%arg0: i32, %arg1: i32) -> (i32, i32) {
    %c0_i32 = arith.constant 0 : i32
    %c0_i32_0 = arith.constant 0 : i32
    %c0_i32_1 = arith.constant 0 : i32
    return %c0_i32, %c0_i32_0 : i32, i32
  }
  func.func @transform_5(%arg0: i32, %arg1: i32) -> (i32, i32, i32) {
    %c0_i32 = arith.constant 0 : i32
    %c0_i32_0 = arith.constant 0 : i32
    return %arg1, %arg0, %c0_i32 : i32, i32, i32
  }
  func.func @transform_6(%arg0: i32, %arg1: i32) -> (i32, i32) {
    %c0_i32 = arith.constant 0 : i32
    %c0_i32_0 = arith.constant 0 : i32
    return %arg0, %c0_i32 : i32, i32
  }
}

</mosaic_0001>

<bundles_post_ra>
// kernel: tpu_custom_call.1
= control target key start
LH: loop header
LB: loop body
LE: loop exit
PB: predicated region body
PF: predicated region fallthrough
CT: control target
= control target key end

     0   :  { %s2725_s0 = inlined_call_operand.hbm [shape: f32[8,8,384], index: 0, kind: input, shape index: {}]   ;;  %s2726_s1 = inlined_call_operand.vmem [shape: f32[8,8,1], index: 1, kind: input, shape index: {}]   ;;  %s2727_s2 = inlined_call_operand.vmem [shape: f32[8,8,1], index: 2, kind: input, shape index: {}]   ;;  %s2728_s3 = inlined_call_operand.hbm [shape: f32[128,384], index: 3, kind: input, shape index: {}]   ;;  %s2729_s4 = inlined_call_operand.vmem [shape: f32[1,384], index: 4, kind: input, shape index: {}]   ;;  %s2730_s5 = inlined_call_operand.hbm [shape: f32[8,8,128], index: 5, kind: output, shape index: {0}]   ;;  %s2731_s6 = inlined_call_operand.hbm [shape: f32[8,128], index: 6, kind: output, shape index: {1}]  }
   0x1   :  { %2739 = sst [smem:[#allocation15_spill]] %s2728_s3 }
   0x2   :  { %12 = vsyncpa [#allocation4], 0 }
   0x3   :  { %14 = vsyncpa [#allocation4 + $0x1], 0 }
   0x4   :  { %15 = vsyncpa [#allocation7], 0 }
   0x5   :  { %16 = vsyncpa [#allocation5], 0 }
   0x6   :  { %18 = vsyncpa [#allocation5 + $0x1], 0 }
   0x7   :  { %19 = vsyncpa [#allocation10], 0  ;;  %s2208_s21 = smov 0   ;;  %s2210_s22 = smov 0  }
   0x8   :  { %s2212_s23 = smov 0   ;;  %s2214_s24 = smov 0  }
   0x9   :  { %s2216_s25 = smov 0   ;;  %s2218_s26 = smov 0  }
   0xa LB: > { %s1367_s27 = sadd.s32 4294967295, %s2158_s26   ;;  %s1368_s28 = sadd.s32 4294967294, %s2158_s26   ;;  %s2158_s26 = sphi %s2218_s26, %s25_s26   ;;  %s2154_s25 = sphi %s2216_s25, %s2762_s25   ;;  %s2150_s24 = sphi %s2214_s24, %s2761_s24   ;;  %s2146_s23 = sphi %s2212_s23, %s2760_s23   ;;  %s2142_s22 = sphi %s2210_s22, %s2759_s22   ;;  %s2138_s21 = sphi %s2208_s21, %s2758_s21  }
   0xb   : > { %p59_p0 = scmp.ne.s32.totalorder %s2142_s22, %s2138_s21  ;;  %p2242_p1 = scmp.eq.s32.totalorder %s1367_s27, 0 }
   0xc   : > { %p2246_p2 = scmp.eq.s32.totalorder %s1367_s27, 1  ;;  %p189_p3 = scmp.eq.s32.totalorder %s1368_s28, 1 }
   0xd   : > { %s2740_s29 = scalar_select %p2242_p1, 1, 0 }
   0xe   : > { %s2741_s30 = scalar_select %p2246_p2, 1, 0 }
   0xf   : > { %p2252_p4 = por %p2242_p1, %p59_p0  ;;  %p1369_p5 = scmp.ge.s32.totalorder %s2158_s26, 1 }
  0x10   : > { %p2257_p6 = por %p189_p3, %p59_p0  ;;  %p222_p7 = scmp.lt.s32.totalorder %s2158_s26, 3 }
  0x11   : > { %s2742_s7 = scalar_select %p2252_p4, 1, 0 }
  0x12   : > { %s2743_s8 = scalar_select %p2257_p6, 1, 0 }
  0x13   : > { %p2262_p8 = pnand %p1369_p5, %p222_p7  ;;  %s2160_s10 = smov [#allocation6]  }
  0x14   : > { %s234_s11 = sshll.u32 %s2160_s10, 4  ;;  %s34_s13 = sadd.s32 1, %s2154_s25  ;;  %s235_s11 = int_to_ptr.vmem [resolvable:$true] %s234_s11 }
  0x15   : > { %s2744_s9 = scalar_select %p2262_p8, 1, 0 }
  0x16   : > { %p1865_p9 = pneg %p2262_p8  ;;  %s2746_s3 = sld [smem:[#allocation15_spill]] }
  0x18   : > { %p2271_p11 = pnand %p1865_p9, %p2242_p1 }
  0x1a   : > { %p1986_p13 = pneg %p2271_p11 }
  0x1c   : > { %s1984_s16 = scalar_lea.hbm %s2746_s3, 6144 }
  0x1d   : > { %p1985_p12 = scmp.ne.s32.totalorder %s2746_s3, %s1984_s16  ;;  %p1991_p5 = scmp.lt.u32.totalorder %s1984_s16, %s2746_s3 }
  0x1f   : > { %p1987_p0 = pnand %p1986_p13, %p1985_p12 }
  0x21   : > { %p1988_p3 = pneg %p1987_p0 }
  0x23   : > { %p1993_p7 = pnand %p1991_p5, %p1988_p3 }
  0x25   : > { %1996 = shalt.err (!%p1993_p7)
}
  0x26   : > { %s1997_s27 = scalar_lea.vmem %s235_s11, 6144  ;;  %p2005_p1 = scmp.lt.s32.totalorder %s235_s11, %s235_s11 }
  0x27   : > { %p1998_p9 = scmp.ne.s32.totalorder %s235_s11, %s1997_s27  ;;  %p2006_p4 = scmp.lt.s32.totalorder %s1997_s27, %s1997_s27 }
  0x29   : > { %p2000_p10 = pnand %p1998_p9, %p1986_p13  ;;  %p2007_p8 = por %p2006_p4, %p2005_p1 }
  0x2b   : > { %p2001_p6 = pneg %p2000_p10 }
  0x2d   : > { %p2008_p2 = pnand %p2007_p8, %p2001_p6 }
  0x2f   : > { %2011 = shalt.err (!%p2008_p2)
}
  0x30   : > { %s2737_s28 = smov 384   ;;  %s2738_s10 = smov 24  }
  0x31   : > { %1868 = dma.hbm_to_vmem [thread:$0]  (!%p2271_p11), %s2746_s3, 6144, %s235_s11, [#allocation7], %s2737_s28, %s2737_s28, %s2738_s10  }
  0x32   : > { %p35_p1 = scmp.ge.s32.totalorder %s34_s13, 2  ;;  %s46_s16 = sadd.s32 1, %s2146_s23 }
  0x33   : > { %p53_p2 = scmp.ne.s32.totalorder %s2146_s23, %s2142_s22  ;;  %p54_p4 = scmp.eq.s32.totalorder %s2158_s26, 0 }
  0x34   : > { %s2764_s13 = smov (%p35_p1, %s34_s13), 0  ;;  %p2747_p8 = scmp.ne.s32.totalorder %s2741_s30, 0 }
  0x35   : > { %p55_p6 = por %p54_p4, %p53_p2  ;;  %s41_s12 = ssub.s32 %s2154_s25, %s2764_s13 }
  0x36   : > { %p2303_p10 = por %p2747_p8, %p53_p2  ;;  %p1878_p12 = scmp.lt.s32.totalorder %s2158_s26, 2 }
  0x37   : > { %p44_p13 = scmp.eq.s32.totalorder %s41_s12, 0  ;;  %s251_s18 = sand.u32 1, %s2146_s23  }
  0x38   : > { %s1850_s19 = smul.u32 96, %s251_s18  ;;  %p2315_p11 = pnand %p1878_p12, %p55_p6 }
  0x39   : > { %s2312_s20 = scalar_select %p44_p13, %s2146_s23, %s46_s16  }
  0x3a   : > { %s1851_s11 = smul.u32 1536, %s2154_s25  ;;  %s255_s27 = scalar_lea.vmem [#allocation3], %s1850_s19 }
  0x3b   : > { %s265_s14 = sshll.u32 %s255_s27, 4  ;;  %s2326_s16 = scalar_lea.sflag [#allocation4], %s251_s18  ;;  %s2324_s14 = int_to_ptr.vmem [resolvable:$true] %s265_s14 }
  0x3c   : > { %s2322_s3 = scalar_lea.hbm %s2725_s0, %s1851_s11  ;;  %p2014_p3 = pneg %p2315_p11 }
  0x3d   : > { %s2012_s12 = scalar_lea.hbm %s2322_s3, 1536  ;;  %s2017_s19 = scalar_lea.hbm %s2725_s0, 3072 }
  0x3e   : > { %p2013_p0 = scmp.ne.s32.totalorder %s2322_s3, %s2012_s12  ;;  %p2018_p9 = scmp.lt.u32.totalorder %s2322_s3, %s2725_s0 }
  0x3f   : > { %p2019_p1 = scmp.lt.u32.totalorder %s2017_s19, %s2012_s12  ;;  %p2021_p4 = scmp.lt.u32.totalorder %s2012_s12, %s2322_s3 }
  0x40   : > { %p2015_p5 = pnand %p2014_p3, %p2013_p0 }
  0x41   : > { %p2020_p2 = por %p2019_p1, %p2018_p9 }
  0x42   : > { %p2016_p7 = pneg %p2015_p5 }
  0x43   : > { %p2022_p6 = por %p2021_p4, %p2020_p2 }
  0x45   : > { %p2023_p8 = pnand %p2022_p6, %p2016_p7 }
  0x47   : > { %2026 = shalt.err (!%p2023_p8)
}
  0x48   : > { %s2027_s18 = scalar_lea.vmem %s2324_s14, 1536  ;;  %s2163_s28 = smov [#allocation3]  }
  0x49   : > { %p2028_p12 = scmp.ne.s32.totalorder %s2324_s14, %s2027_s18  ;;  %s2032_s10 = sshll.u32 %s2163_s28, 4  ;;  %s2033_s10 = int_to_ptr.vmem [resolvable:$false] %s2032_s10 }
  0x4a   : > { %s2034_s11 = scalar_lea.vmem %s2033_s10, 3072  ;;  %p2035_p5 = scmp.lt.s32.totalorder %s2324_s14, %s2033_s10 }
  0x4b   : > { %p2030_p13 = pnand %p2028_p12, %p2014_p3  ;;  %p2036_p9 = scmp.lt.s32.totalorder %s2034_s11, %s2027_s18 }
  0x4d   : > { %p2031_p0 = pneg %p2030_p13  ;;  %p2037_p1 = por %p2036_p9, %p2035_p5 }
  0x4f   : > { %p2038_p2 = pnand %p2037_p1, %p2031_p0 }
  0x51   : > { %2041 = shalt.err (!%p2038_p2)
}
  0x52   : > { %s2750_s12 = smov 24   ;;  %s2751_s19 = smov 384  }
  0x53   : > { %1872 = dma.hbm_to_vmem [thread:$0]  (!%p2315_p11), %s2322_s3, 1536, %s2324_s14, %s2326_s16, %s2751_s19, %s2751_s19, %s2750_s12  }
  0x54   : > { %p2752_p3 = scmp.ne.s32.totalorder %s2744_s9, 0 }
  0x55   : > { %s2360_s27 = sand.u32 (!%p2752_p3), 1, %s2142_s22   ;;  %p2753_p7 = scmp.ne.s32.totalorder (!%p2752_p3), %s2742_s7, 0 }
  0x56   : > { %301 = sbr.rel (%p2752_p3) target bundleno = 1282 (0x502), region = 40  ;;  %s304_s28 = scalar_lea.sflag (!%p2752_p3), [#allocation4], %s2360_s27 }
  0x57   : > { %s1852_s18 = smul.u32 (!%p2752_p3), 96, %s2360_s27 }
  0x59   : > { %s2364_s10 = scalar_lea.vmem (!%p2752_p3), [#allocation3], %s1852_s18 }
  0x5d   : > { %2121 = dma.done.wait (%p2753_p7), %s304_s28, 1536  }
  0x5e   : > { %2123 = vsyncadd (%p2753_p7), %s304_s28, 4294965760  ;;  %p2754_p11 = scmp.ne.s32.totalorder %s2740_s29, 0 }
  0x60   : > { %2125 = dma.done.wait (%p2754_p11), [#allocation7], 6144  }
  0x61   : > { %2127 = vsyncadd (%p2754_p11), [#allocation7], 4294961152  ;;  %s1377_s3 = sshll.u32 %s2360_s27, 5  ;;  %s1378_s9 = sshll.u32 %s2150_s24, 2 }
  0x62   : > { %p358_p4 = scmp.lt.s32.totalorder %s1378_s9, 7  ;;  %s2386_s18 = scalar_lea.vmem [#allocation8], %s1377_s3 }
  0x63   : > { %p1382_p6 = scmp.ne.s32.totalorder %s2150_s24, 0 }
  0x64   : > { %s2766_s9 = smov (!%p358_p4, %s1378_s9), 7  ;;  %v2164_v0 = vmov (!%p1382_p6), 0.0  }
  0x65   : > { %s1379_s14 = sshll.u32 %s2766_s9, 3  ;;  %379 = sbr.rel (%p1382_p6) target bundleno = 108 (0x6c), region = 52  ;;  %380 = vst [vmem:[#allocation2] sm:$0xff] (!%p1382_p6), %v2164_v0 }
  0x66   : > { %s2379_s11 = scalar_lea.vmem %s2726_s1, %s1379_s14  ;;  %s2384_s19 = scalar_lea.vmem %s2727_s2, %s1379_s14 }
  0x6c PF: > { %v382_v1 = vld [vmem:[#allocation6 + $0x8] sm:$0xff]  ;;  %v385_v2 = vld [vmem:[#allocation6 + $0x20] sm:$0xff]  ;;  %v384_v5 = vld [vmem:[#allocation6 + $0x18] sm:$0xff]  ;;  %v2165_v8 = vmov 0.0|0.0   ;;  %v2166_v9 = vmov 0.0   ;;  %vm2167_vm0 = vmmov 0  }
  0x6d   : > { %v381_v3 = vld [vmem:[#allocation6] sm:$0xff]  ;;  %v2389_v4 = vpack.c.bf16 %v385_v2, %v382_v1  ;;  %v388_v6 = vld [vmem:[#allocation6 + $0x38] sm:$0xff]  ;;  %v391_v7 = vld [vmem:[#allocation6 + $0x50] sm:$0xff]  ;;  %1658 = vmatprep.subr.bf16.mxu1 %v2165_v8  ;;  %516 = vmatprep.mubr.f32.mxu0 %v2166_v9  ;;  %v2168_v15 = vmov 0   ;;  %p1409_p8 = scmp.ne.s32.totalorder %s2150_s24, 1 }
  0x6e   : > { %v2393_v10 = vpack.c.bf16 %v384_v5, %v381_v3  ;;  %v2395_v11 = vpack.c.bf16 %v391_v7, %v388_v6  ;;  %v387_v12 = vld [vmem:[#allocation6 + $0x30] sm:$0xff]  ;;  %v390_v13 = vld [vmem:[#allocation6 + $0x48] sm:$0xff]  ;;  %1518 = vmatprep.mubr.msk.f32.mxu1 %vm2167_vm0, %v2166_v9  ;;  %1942 = vset.pattern.permute.xlu0 %v2168_v15  ;;  %v397_v16 = vld [vmem:[#allocation6 + $0x80] sm:$0xff] }
  0x6f   : > { %v394_v14 = vld [vmem:[#allocation6 + $0x68] sm:$0xff]  ;;  %1627 = vmatprep.subr.bf16.mxu0 %v2389_v4  ;;  %1943 = vset.pattern.permute.xlu1 %v2168_v15  ;;  %v2401_v17 = vpack.c.bf16 %v390_v13, %v387_v12  ;;  %v393_v19 = vld [vmem:[#allocation6 + $0x60] sm:$0xff]  ;;  %v396_v20 = vld [vmem:[#allocation6 + $0x78] sm:$0xff] }
  0x70   : > { %1629 = vmatpush1.bf16.msra.mxu0 %v2393_v10  ;;  %v2404_v18 = vpack.c.bf16 %v397_v16, %v394_v14  ;;  %v400_v21 = vld [vmem:[#allocation6 + $0x98] sm:$0xff]  ;;  %v403_v22 = vld [vmem:[#allocation6 + $0xb0] sm:$0xff]  ;;  %v2407_v23 = vpack.c.bf16 %v396_v20, %v393_v19  ;;  %v402_v26 = vld [vmem:[#allocation6 + $0xa8] sm:$0xff] }
  0x71   : > { %1631 = vmatprep.subr.bf16.mxu0 %v2395_v11  ;;  %v2410_v24 = vpack.c.bf16 %v403_v22, %v400_v21  ;;  %v399_v25 = vld [vmem:[#allocation6 + $0x90] sm:$0xff]  ;;  %v406_v27 = vld [vmem:[#allocation6 + $0xc8] sm:$0xff]  ;;  %v409_v28 = vld [vmem:[#allocation6 + $0xe0] sm:$0xff] }
  0x72   : > { %v383_v29 = vld [vmem:[#allocation6 + $0x10] sm:$0xff]  ;;  %v386_v30 = vld [vmem:[#allocation6 + $0x28] sm:$0xff]  ;;  %v389_v31 = vld [vmem:[#allocation6 + $0x40] sm:$0xff]  ;;  %v2413_v32 = vpack.c.bf16 %v402_v26, %v399_v25  ;;  %v2418_v35 = vpack.c.bf16 %v409_v28, %v406_v27 }
  0x73   : > { %v2415_v33 = vpack.c.bf16 %v386_v30, %v383_v29  ;;  %v392_v34 = vld [vmem:[#allocation6 + $0x58] sm:$0xff]  ;;  %v405_v36 = vld [vmem:[#allocation6 + $0xc0] sm:$0xff]  ;;  %v415_v39 = vld [vmem:[#allocation6 + $0x110] sm:$0xff]  ;;  %v437_v30 = vlaneseq }
  0x74   : > { %1633 = vmatpush1.bf16.msra.mxu0 %v2401_v17  ;;  %v408_v37 = vld [vmem:[#allocation6 + $0xd8] sm:$0xff]  ;;  %v2421_v40 = vpack.c.bf16 %v392_v34, %v389_v31  ;;  %v395_v41 = vld [vmem:[#allocation6 + $0x70] sm:$0xff]  ;;  %v398_v42 = vld [vmem:[#allocation6 + $0x88] sm:$0xff] }
  0x75   : > { %1635 = vmatprep.subr.bf16.mxu0 %v2404_v18  ;;  %v412_v38 = vld [vmem:[#allocation6 + $0xf8] sm:$0xff]  ;;  %1660 = vmatpush3.bf16.msra.mxu1 %v2415_v33  ;;  %v2425_v43 = vpack.c.bf16 %v408_v37, %v405_v36  ;;  %v411_v46 = vld [vmem:[#allocation6 + $0xf0] sm:$0xff]  ;;  %v414_v47 = vld [vmem:[#allocation6 + $0x108] sm:$0xff]  ;;  %v2432_v50 = vpack.c.bf16 %v398_v42, %v395_v41  ;;  %v438_v31 = vshrl.u32 %v437_v30, 7 }
  0x76   : > { %1661 = vmatprep.subr.bf16.mxu1 %v2165_v8  ;;  %v434_v44 = vld [vmem:[%s2379_s11] sm:$0xff]  ;;  %v2429_v45 = vpack.c.bf16 %v415_v39, %v412_v38  ;;  %v418_v48 = vld [vmem:[#allocation6 + $0x128] sm:$0xff]  ;;  %v421_v49 = vld [vmem:[#allocation6 + $0x140] sm:$0xff]  ;;  %v2437_v54 = vpack.c.bf16 %v414_v47, %v411_v46 }
  0x77   : > { %602 = vperm.xlu0 %1942, %v434_v44   ;;  %v435_v51 = vld [vmem:[%s2384_s19] sm:$0xff]  ;;  %v401_v52 = vld [vmem:[#allocation6 + $0xa0] sm:$0xff]  ;;  %v2440_v55 = vpack.c.bf16 %v421_v49, %v418_v48  ;;  %v427_v59 = vld [vmem:[#allocation6 + $0x170] sm:$0xff]  ;;  %v443_v34 = vsub.s32 1, %v438_v31  ;;  %v439_v37 = vsub.s32 0, %v438_v31 }
  0x78   : > { %1637 = vmatpush1.bf16.msra.mxu0 %v2407_v23  ;;  %v404_v53 = vld [vmem:[#allocation6 + $0xb8] sm:$0xff]  ;;  %v417_v56 = vld [vmem:[#allocation6 + $0x120] sm:$0xff]  ;;  %v1396_v61 = vld [vmem:[%s2379_s11 + $0x10] sm:$0xff] }
  0x79   : > { %1639 = vmatprep.subr.bf16.mxu0 %v2410_v24  ;;  %1663 = vmatpush3.bf16.msra.mxu1 %v2421_v40  ;;  %v420_v57 = vld [vmem:[#allocation6 + $0x138] sm:$0xff]  ;;  %v2443_v60 = vpack.c.bf16 %v404_v53, %v401_v52  ;;  %v407_v62 = vld [vmem:[#allocation6 + $0xd0] sm:$0xff]  ;;  %v410_v63 = vld [vmem:[#allocation6 + $0xe8] sm:$0xff] }
  0x7a   : > { %1664 = vmatprep.subr.bf16.mxu1 %v2165_v8  ;;  %v424_v58 = vld [vmem:[#allocation6 + $0x158] sm:$0xff]  ;;  %v2448_v0 = vpack.c.bf16 %v420_v57, %v417_v56  ;;  %v423_v2 = vld [vmem:[#allocation6 + $0x150] sm:$0xff]  ;;  %v426_v3 = vld [vmem:[#allocation6 + $0x168] sm:$0xff]  ;;  %v2454_v5 = vpack.c.bf16 %v410_v63, %v407_v62 }
  0x7b   : > { %622 = vperm.xlu0 %1942, %v435_v51   ;;  %v2451_v1 = vpack.c.bf16 %v427_v59, %v424_v58  ;;  %v1404_v6 = vld [vmem:[%s2379_s11 + $0x18] sm:$0xff]  ;;  %v413_v7 = vld [vmem:[#allocation6 + $0x100] sm:$0xff]  ;;  %v416_v12 = vld [vmem:[#allocation6 + $0x118] sm:$0xff]  ;;  %v2459_v13 = vpack.c.bf16 %v426_v3, %v423_v2 }
  0x7c   : > { %1641 = vmatpush1.bf16.msra.mxu0 %v2413_v32  ;;  %v2463_v14 = vpack.c.bf16 %v416_v12, %v413_v7  ;;  %v419_v15 = vld [vmem:[#allocation6 + $0x130] sm:$0xff]  ;;  %v422_v16 = vld [vmem:[#allocation6 + $0x148] sm:$0xff]  ;;  %v2467_v19 = vld [vmem:[#allocation2] sm:$0xff] }
  0x7d   : > { %1643 = vmatprep.subr.bf16.mxu0 %v2418_v35  ;;  %1666 = vmatpush3.bf16.msra.mxu1 %v2432_v50  ;;  %v2471_v20 = vpack.c.bf16 %v422_v16, %v419_v15  ;;  %v425_v21 = vld [vmem:[#allocation6 + $0x160] sm:$0xff]  ;;  %v428_v22 = vld [vmem:[#allocation6 + $0x178] sm:$0xff]  ;;  %v1397_v28 = vld [vmem:[%s2384_s19 + $0x10] sm:$0xff] }
  0x7e   : > { %1667 = vmatprep.subr.bf16.mxu1 %v2165_v8  ;;  %v2479_v25 = vpack.c.bf16 %v428_v22, %v425_v21  ;;  %v1388_v26 = vld [vmem:[%s2379_s11 + $0x8] sm:$0xff]  ;;  %v1405_v29 = vld [vmem:[%s2384_s19 + $0x18] sm:$0xff]  ;;  %v429_v36 = vld [vmem:[%s2729_s4] sm:$0x7] }
  0x7f   : > { %977 = vperm.xlu0 %1942, %v1396_v61   ;;  %789 = vperm.xlu1 %1943, %v1388_v26   ;;  %v1389_v27 = vld [vmem:[%s2384_s19 + $0x8] sm:$0xff]  ;;  %v2524_v38 = vrot.slane %v429_v36, %v443_v34  ;;  %v2526_v41 = vrot.slane %v429_v36, %v439_v37  ;;  %v432_v42 = vld [vmem:[%s2364_s10 + $0x8] sm:$0xff]  ;;  %v447_v61 = vsub.s32 2, %v438_v31  ;;  %v433_v7 = vld [vmem:[%s2364_s10 + $0x10] sm:$0xff] }
  0x80   : > { %1645 = vmatpush1.bf16.msra.mxu0 %v2425_v43  ;;  %v431_v49 = vld [vmem:[%s2364_s10] sm:$0xff] }
  0x81   : > { %1647 = vmatprep.subr.bf16.mxu0 %v2429_v45  ;;  %1669 = vmatpush3.bf16.msra.mxu1 %v2443_v60  ;;  %v2532_v62 = vrot.slane %v429_v36, %v447_v61 }
  0x82   : > { %1670 = vmatprep.subr.bf16.mxu1 %v2165_v8 }
  0x83   : > { %1165 = vperm.xlu0 %1942, %v1404_v6   ;;  %809 = vperm.xlu1 %1943, %v1389_v27  }
  0x84   : > { %1649 = vmatpush1.bf16.msra.mxu0 %v2437_v54 }
  0x85   : > { %1651 = vmatprep.subr.bf16.mxu0 %v2440_v55  ;;  %1672 = vmatpush3.bf16.msra.mxu1 %v2454_v5 }
  0x86   : > { %1673 = vmatprep.subr.bf16.mxu1 %v2165_v8 }
  0x87   : > { %997 = vperm.xlu1 %1943, %v1397_v28  }
  0x88   : > { %1653 = vmatpush1.bf16.msra.mxu0 %v2448_v0 }
  0x89   : > { %1655 = vmatprep.subr.bf16.mxu0 %v2451_v1  ;;  %1675 = vmatpush3.bf16.msra.mxu1 %v2463_v14 }
  0x8a   : > { %1676 = vmatprep.subr.bf16.mxu1 %v2165_v8 }
  0x8b   : > { %1185 = vperm.xlu1 %1943, %v1405_v29  }
  0x8c   : > { %1657 = vmatpush1.bf16.msra.mxu0 %v2459_v13 }
  0x8d   : > { %1683 = vmatprep.subr.bf16.mxu0 %v2389_v4  ;;  %1678 = vmatpush3.bf16.msra.mxu1 %v2471_v20 }
  0x8e   : > { %1679 = vmatprep.subr.bf16.mxu1 %v2165_v8 }
  0x8f   : > { %517 = vmatmul.mubr.f32.vlgmr.msra.gmra.mrb[0].mxu0 %v2467_v19 }
  0x90   : > { %1685 = vmatpush1.bf16.msra.mxu0 %v2393_v10  ;;  %703 = vmatprep.mubr.f32.mxu0 %v2166_v9 }
  0x91   : > { %1687 = vmatprep.subr.bf16.mxu0 %v2395_v11  ;;  %1681 = vmatpush3.bf16.msra.mxu1 %v2479_v25 }
  0x92   : > { %1714 = vmatprep.subr.bf16.mxu1 %v2165_v8 }
  0x94   : > { %1689 = vmatpush1.bf16.msra.mxu0 %v2401_v17  ;;  %1519 = vmatmul.mubr.f32.vlgmr.msra.gmra.mrb[0].mxu1 %v2467_v19 }
  0x95   : > { %1691 = vmatprep.subr.bf16.mxu0 %v2404_v18  ;;  %1716 = vmatpush3.bf16.msra.mxu1 %v2415_v33 }
  0x96   : > { %1553 = vmatprep.mubr.msk.f32.mxu1 %vm2167_vm0, %v2166_v9  ;;  %1717 = vmatprep.subr.bf16.mxu1 %v2165_v8 }
  0x98   : > { %1693 = vmatpush1.bf16.msra.mxu0 %v2407_v23 }
  0x99   : > { %1695 = vmatprep.subr.bf16.mxu0 %v2410_v24  ;;  %1719 = vmatpush3.bf16.msra.mxu1 %v2421_v40 }
  0x9a   : > { %1720 = vmatprep.subr.bf16.mxu1 %v2165_v8 }
  0x9c   : > { %1697 = vmatpush1.bf16.msra.mxu0 %v2413_v32 }
  0x9d   : > { %1699 = vmatprep.subr.bf16.mxu0 %v2418_v35  ;;  %1722 = vmatpush3.bf16.msra.mxu1 %v2432_v50 }
  0x9e   : > { %1723 = vmatprep.subr.bf16.mxu1 %v2165_v8 }
  0xa0   : > { %1701 = vmatpush1.bf16.msra.mxu0 %v2425_v43 }
  0xa1   : > { %1703 = vmatprep.subr.bf16.mxu0 %v2429_v45  ;;  %1725 = vmatpush3.bf16.msra.mxu1 %v2443_v60 }
  0xa2   : > { %1726 = vmatprep.subr.bf16.mxu1 %v2165_v8 }
  0xa4   : > { %1705 = vmatpush1.bf16.msra.mxu0 %v2437_v54 }
  0xa5   : > { %1707 = vmatprep.subr.bf16.mxu0 %v2440_v55  ;;  %1728 = vmatpush3.bf16.msra.mxu1 %v2454_v5 }
  0xa6   : > { %1729 = vmatprep.subr.bf16.mxu1 %v2165_v8 }
  0xa8   : > { %1709 = vmatpush1.bf16.msra.mxu0 %v2448_v0 }
  0xa9   : > { %1711 = vmatprep.subr.bf16.mxu0 %v2451_v1  ;;  %1731 = vmatpush3.bf16.msra.mxu1 %v2463_v14 }
  0xaa   : > { %1732 = vmatprep.subr.bf16.mxu1 %v2165_v8 }
  0xac   : > { %1713 = vmatpush1.bf16.msra.mxu0 %v2459_v13 }
  0xad   : > { %1739 = vmatprep.subr.bf16.mxu0 %v2389_v4  ;;  %1734 = vmatpush3.bf16.msra.mxu1 %v2471_v20 }
  0xae   : > { %1735 = vmatprep.subr.bf16.mxu1 %v2165_v8 }
  0xb1   : > { %1737 = vmatpush3.bf16.msra.mxu1 %v2479_v25 }
  0xb2   : > { %1770 = vmatprep.subr.bf16.mxu1 %v2165_v8 }
  0xf6   : > { %v603_v21 = vpop.permute.xlu0 %602 }
  0xfa   : > { %v623_v30 = vpop.permute.xlu0 %622 }
 0x162   : > { %v518_v39 = vpop.f32.mrb[0].mxu0 }
 0x163   : > { %v520_v44 = vpop.f32.mrb[1].mxu0  ;;  %v519_v48 = vadd.f32 %v518_v39, %v2526_v41 }
 0x164   : > { %v521_v46 = vadd.f32 %v520_v44, %v2524_v38 }
 0x165   : > { %v593_v52 = vadd.f32 %v519_v48, %v431_v49 }
 0x166   : > { %v606_v47 = vadd.f32 %v521_v46, %v432_v42  ;;  %v1386_v42 = vld [vmem:[%s2364_s10 + $0x20] sm:$0xff] }
 0x167   : > { %v589_v53 = vpop.f32.mrb[0].mxu1  ;;  %v1383_v57 = vmul.f32 -1.442695, %v593_v52 }
 0x168   : > { %v1384_v51 = vmul.f32 -1.442695, %v606_v47  ;;  %v1520_v56 = vpop.f32.mrb[1].mxu1  ;;  %v590_v2 = vadd.f32 %v589_v53, %v2532_v62 }
 0x16a   : > { %1944 = vpow2.f32 %v1384_v51  ;;  %v1385_v51 = vld [vmem:[%s2364_s10 + $0x18] sm:$0xff] }
 0x16b   : > { %1946 = vpow2.f32 %v1383_v57 }
 0x174   : > { %v1945_v58 = vpop.eup %1944 }
 0x175   : > { %v610_v59 = vadd.f32 1.0, %v1945_v58  ;;  %v1947_v63 = vpop.eup %1946 }
 0x176   : > { %v597_v3 = vadd.f32 1.0, %v1947_v63 }
 0x177   : > { %1948 = vrcp.f32 %v610_v59 }
 0x178   : > { %1950 = vrcp.f32 %v597_v3 }
 0x181   : > { %v1949_v6 = vpop.eup %1948 }
 0x182   : > { %v613_v12 = vmul.f32 %v1949_v6, %v590_v2  ;;  %v1951_v16 = vpop.eup %1950  ;;  %v1387_v2 = vld [vmem:[%s2364_s10 + $0x28] sm:$0xff] }
 0x183   : > { %v605_v26 = vmul.f32 %v1951_v16, %v603_v21 }
 0x184   : > { %v614_v15 = vadd.f32 %v613_v12, %v433_v7  ;;  %v790_v12 = vpop.permute.xlu1 %789 }
 0x186   : > { %1952 = vtanh.f32 %v614_v15 }
 0x190   : > { %v1953_v22 = vpop.eup %1952 }
 0x191   : > { %v616_v27 = vsub.f32 %v1953_v22, %v2467_v19 }
 0x193   : > { %v617_v28 = vmul.f32 %v616_v27, %v605_v26  ;;  %v810_v27 = vpop.permute.xlu1 %809 }
 0x195   : > { %v618_v29 = vadd.f32 %v617_v28, %v2467_v19 }
 0x197   : > { %v619_v31 = vsub.f32 %v618_v29, %v2467_v19  ;;  %v628_v34 = vmul.f32 %v623_v30, %v618_v29 }
 0x199   : > { %v625_v36 = vmul.f32 %v623_v30, %v619_v31  ;;  %629 = vst [vmem:[%s2386_s18] sm:$0xff] %v628_v34 }
 0x19b   : > { %v2541_v37 = vadd.f32 %v625_v36, %v2467_v19 }
 0x19d   : > { %704 = vmatmul.mubr.f32.vlgmr.msra.gmra.mrb[2].mxu0 %v2541_v37  ;;  %1554 = vmatmul.mubr.f32.vlgmr.msra.gmra.mrb[2].mxu1 %v2541_v37 }
 0x19e   : > { %1741 = vmatpush1.bf16.msra.mxu0 %v2393_v10  ;;  %1772 = vmatpush3.bf16.msra.mxu1 %v2415_v33 }
 0x19f   : > { %1743 = vmatprep.subr.bf16.mxu0 %v2395_v11  ;;  %1773 = vmatprep.subr.bf16.mxu1 %v2165_v8 }
 0x1a0   : > { %891 = vmatprep.mubr.f32.mxu0 %v2166_v9  ;;  %1588 = vmatprep.mubr.msk.f32.mxu1 %vm2167_vm0, %v2166_v9 }
 0x1a2   : > { %1745 = vmatpush1.bf16.msra.mxu0 %v2401_v17  ;;  %1775 = vmatpush3.bf16.msra.mxu1 %v2421_v40 }
 0x1a3   : > { %1747 = vmatprep.subr.bf16.mxu0 %v2404_v18  ;;  %1776 = vmatprep.subr.bf16.mxu1 %v2165_v8 }
 0x1a6   : > { %1749 = vmatpush1.bf16.msra.mxu0 %v2407_v23  ;;  %1778 = vmatpush3.bf16.msra.mxu1 %v2432_v50 }
 0x1a7   : > { %1751 = vmatprep.subr.bf16.mxu0 %v2410_v24  ;;  %1779 = vmatprep.subr.bf16.mxu1 %v2165_v8 }
 0x1aa   : > { %1753 = vmatpush1.bf16.msra.mxu0 %v2413_v32  ;;  %1781 = vmatpush3.bf16.msra.mxu1 %v2443_v60 }
 0x1ab   : > { %1755 = vmatprep.subr.bf16.mxu0 %v2418_v35  ;;  %1782 = vmatprep.subr.bf16.mxu1 %v2165_v8 }
 0x1ae   : > { %1757 = vmatpush1.bf16.msra.mxu0 %v2425_v43  ;;  %1784 = vmatpush3.bf16.msra.mxu1 %v2454_v5 }
 0x1af   : > { %1759 = vmatprep.subr.bf16.mxu0 %v2429_v45  ;;  %1785 = vmatprep.subr.bf16.mxu1 %v2165_v8 }
 0x1b2   : > { %1761 = vmatpush1.bf16.msra.mxu0 %v2437_v54  ;;  %1787 = vmatpush3.bf16.msra.mxu1 %v2463_v14 }
 0x1b3   : > { %1763 = vmatprep.subr.bf16.mxu0 %v2440_v55  ;;  %1788 = vmatprep.subr.bf16.mxu1 %v2165_v8 }
 0x1b6   : > { %1765 = vmatpush1.bf16.msra.mxu0 %v2448_v0  ;;  %1790 = vmatpush3.bf16.msra.mxu1 %v2471_v20 }
 0x1b7   : > { %1767 = vmatprep.subr.bf16.mxu0 %v2451_v1  ;;  %1791 = vmatprep.subr.bf16.mxu1 %v2165_v8 }
 0x1ba   : > { %1769 = vmatpush1.bf16.msra.mxu0 %v2459_v13  ;;  %1793 = vmatpush3.bf16.msra.mxu1 %v2479_v25 }
 0x1bb   : > { %1795 = vmatprep.subr.bf16.mxu0 %v2389_v4  ;;  %1826 = vmatprep.subr.bf16.mxu1 %v2165_v8 }
 0x270   : > { %v705_v19 = vpop.f32.mrb[2].mxu0  ;;  %v776_v39 = vpop.f32.mrb[2].mxu1 }
 0x271   : > { %v707_v44 = vpop.f32.mrb[3].mxu0  ;;  %v1555_v46 = vpop.f32.mrb[3].mxu1  ;;  %v706_v49 = vadd.f32 %v705_v19, %v2526_v41  ;;  %v777_v61 = vadd.f32 %v776_v39, %v2532_v62 }
 0x272   : > { %v708_v47 = vadd.f32 %v707_v44, %v2524_v38  ;;  %v998_v19 = vpop.permute.xlu1 %997 }
 0x273   : > { %v780_v53 = vadd.f32 %v1385_v51, %v706_v49  ;;  %v1402_v49 = vld [vmem:[%s2364_s10 + $0x50] sm:$0xff] }
 0x274   : > { %v793_v48 = vadd.f32 %v1386_v42, %v708_v47 }
 0x275   : > { %v1390_v56 = vmul.f32 -1.442695, %v780_v53 }
 0x276   : > { %v1391_v52 = vmul.f32 -1.442695, %v793_v48 }
 0x278   : > { %1954 = vpow2.f32 %v1391_v52 }
 0x279   : > { %1956 = vpow2.f32 %v1390_v56 }
 0x282   : > { %v1955_v4 = vpop.eup %1954 }
 0x283   : > { %v797_v57 = vadd.f32 1.0, %v1955_v4  ;;  %v1957_v58 = vpop.eup %1956 }
 0x284   : > { %v784_v59 = vadd.f32 1.0, %v1957_v58 }
 0x285   : > { %1958 = vrcp.f32 %v797_v57  ;;  %v1401_v57 = vld [vmem:[%s2364_s10 + $0x48] sm:$0xff] }
 0x286   : > { %1960 = vrcp.f32 %v784_v59 }
 0x28f   : > { %v1959_v63 = vpop.eup %1958 }
 0x290   : > { %v800_v3 = vmul.f32 %v1959_v63, %v777_v61  ;;  %v1961_v7 = vpop.eup %1960 }
 0x291   : > { %v792_v16 = vmul.f32 %v1961_v7, %v790_v12 }
 0x292   : > { %v801_v6 = vadd.f32 %v1387_v2, %v800_v3 }
 0x294   : > { %1962 = vtanh.f32 %v801_v6 }
 0x29e   : > { %v1963_v15 = vpop.eup %1962 }
 0x29f   : > { %v803_v21 = vsub.f32 %v1963_v15, %v2541_v37  ;;  %v1403_v15 = vld [vmem:[%s2364_s10 + $0x58] sm:$0xff] }
 0x2a1   : > { %v804_v22 = vmul.f32 %v803_v21, %v792_v16 }
 0x2a3   : > { %v805_v26 = vadd.f32 %v804_v22, %v2541_v37 }
 0x2a5   : > { %v806_v28 = vsub.f32 %v805_v26, %v2541_v37  ;;  %v815_v29 = vmul.f32 %v810_v27, %v805_v26 }
 0x2a7   : > { %v812_v30 = vmul.f32 %v810_v27, %v806_v28  ;;  %1392 = vst [vmem:[%s2386_s18 + $0x8] sm:$0xff] %v815_v29 }
 0x2a9   : > { %v2591_v31 = vadd.f32 %v812_v30, %v2541_v37  ;;  %v1186_v30 = vpop.permute.xlu1 %1185 }
 0x2ab   : > { %892 = vmatmul.mubr.f32.vlgmr.msra.gmra.mrb[4].mxu0 %v2591_v31  ;;  %1589 = vmatmul.mubr.f32.vlgmr.msra.gmra.mrb[4].mxu1 %v2591_v31 }
 0x2ac   : > { %1797 = vmatpush1.bf16.msra.mxu0 %v2393_v10  ;;  %1828 = vmatpush3.bf16.msra.mxu1 %v2415_v33  ;;  %v1393_v33 = vld [vmem:[%s2364_s10 + $0x30] sm:$0xff] }
 0x2ad   : > { %1799 = vmatprep.subr.bf16.mxu0 %v2395_v11  ;;  %1829 = vmatprep.subr.bf16.mxu1 %v2165_v8  ;;  %v1394_v11 = vld [vmem:[%s2364_s10 + $0x38] sm:$0xff] }
 0x2ae   : > { %1079 = vmatprep.mubr.f32.mxu0 %v2166_v9  ;;  %1623 = vmatprep.mubr.msk.f32.mxu1 %vm2167_vm0, %v2166_v9 }
 0x2b0   : > { %1801 = vmatpush1.bf16.msra.mxu0 %v2401_v17  ;;  %1831 = vmatpush3.bf16.msra.mxu1 %v2421_v40 }
 0x2b1   : > { %1803 = vmatprep.subr.bf16.mxu0 %v2404_v18  ;;  %1832 = vmatprep.subr.bf16.mxu1 %v2165_v8 }
 0x2b4   : > { %1805 = vmatpush1.bf16.msra.mxu0 %v2407_v23  ;;  %1834 = vmatpush3.bf16.msra.mxu1 %v2432_v50 }
 0x2b5   : > { %1807 = vmatprep.subr.bf16.mxu0 %v2410_v24  ;;  %1835 = vmatprep.subr.bf16.mxu1 %v2165_v8 }
 0x2b8   : > { %1809 = vmatpush1.bf16.msra.mxu0 %v2413_v32  ;;  %1837 = vmatpush3.bf16.msra.mxu1 %v2443_v60 }
 0x2b9   : > { %1811 = vmatprep.subr.bf16.mxu0 %v2418_v35  ;;  %1838 = vmatprep.subr.bf16.mxu1 %v2165_v8 }
 0x2bc   : > { %1813 = vmatpush1.bf16.msra.mxu0 %v2425_v43  ;;  %1840 = vmatpush3.bf16.msra.mxu1 %v2454_v5 }
 0x2bd   : > { %1815 = vmatprep.subr.bf16.mxu0 %v2429_v45  ;;  %1841 = vmatprep.subr.bf16.mxu1 %v2165_v8 }
 0x2c0   : > { %1817 = vmatpush1.bf16.msra.mxu0 %v2437_v54  ;;  %1843 = vmatpush3.bf16.msra.mxu1 %v2463_v14 }
 0x2c1   : > { %1819 = vmatprep.subr.bf16.mxu0 %v2440_v55  ;;  %1844 = vmatprep.subr.bf16.mxu1 %v2165_v8 }
 0x2c4   : > { %1821 = vmatpush1.bf16.msra.mxu0 %v2448_v0  ;;  %1846 = vmatpush3.bf16.msra.mxu1 %v2471_v20  ;;  %v1395_v0 = vld [vmem:[%s2364_s10 + $0x40] sm:$0xff]  ;;  %v978_v20 = vpop.permute.xlu0 %977 }
 0x2c5   : > { %1823 = vmatprep.subr.bf16.mxu0 %v2451_v1  ;;  %1847 = vmatprep.subr.bf16.mxu1 %v2165_v8 }
 0x2c8   : > { %1825 = vmatpush1.bf16.msra.mxu0 %v2459_v13  ;;  %1849 = vmatpush3.bf16.msra.mxu1 %v2479_v25  ;;  %v1166_v22 = vpop.permute.xlu0 %1165 }
 0x37e   : > { %v893_v9 = vpop.f32.mrb[4].mxu0  ;;  %v964_v10 = vpop.f32.mrb[4].mxu1 }
 0x37f   : > { %v895_v17 = vpop.f32.mrb[5].mxu0  ;;  %v1590_v18 = vpop.f32.mrb[5].mxu1  ;;  %v894_v32 = vadd.f32 %v893_v9, %v2526_v41  ;;  %v965_v55 = vadd.f32 %v964_v10, %v2532_v62 }
 0x380   : > { %v896_v23 = vadd.f32 %v895_v17, %v2524_v38 }
 0x381   : > { %v968_v40 = vadd.f32 %v1393_v33, %v894_v32 }
 0x382   : > { %v981_v24 = vadd.f32 %v1394_v11, %v896_v23 }
 0x383   : > { %v1398_v8 = vmul.f32 -1.442695, %v968_v40 }
 0x384   : > { %v1399_v35 = vmul.f32 -1.442695, %v981_v24 }
 0x386   : > { %1964 = vpow2.f32 %v1399_v35 }
 0x387   : > { %1966 = vpow2.f32 %v1398_v8 }
 0x390   : > { %v1965_v43 = vpop.eup %1964 }
 0x391   : > { %v985_v45 = vadd.f32 1.0, %v1965_v43  ;;  %v1967_v50 = vpop.eup %1966 }
 0x392   : > { %v972_v54 = vadd.f32 1.0, %v1967_v50 }
 0x393   : > { %1968 = vrcp.f32 %v985_v45 }
 0x394   : > { %1970 = vrcp.f32 %v972_v54 }
 0x39d   : > { %v1969_v60 = vpop.eup %1968 }
 0x39e   : > { %v988_v1 = vmul.f32 %v1969_v60, %v965_v55  ;;  %v1971_v13 = vpop.eup %1970 }
 0x39f   : > { %v980_v25 = vmul.f32 %v1971_v13, %v978_v20 }
 0x3a0   : > { %v989_v5 = vadd.f32 %v1395_v0, %v988_v1 }
 0x3a2   : > { %1972 = vtanh.f32 %v989_v5 }
 0x3ac   : > { %v1973_v14 = vpop.eup %1972 }
 0x3ad   : > { %v991_v34 = vsub.f32 %v1973_v14, %v2591_v31 }
 0x3af   : > { %v992_v36 = vmul.f32 %v991_v34, %v980_v25 }
 0x3b1   : > { %v993_v37 = vadd.f32 %v992_v36, %v2591_v31 }
 0x3b3   : > { %v994_v39 = vsub.f32 %v993_v37, %v2591_v31  ;;  %v1003_v42 = vmul.f32 %v998_v19, %v993_v37 }
 0x3b5   : > { %v1000_v44 = vmul.f32 %v998_v19, %v994_v39  ;;  %1400 = vst [vmem:[%s2386_s18 + $0x10] sm:$0xff] %v1003_v42 }
 0x3b7   : > { %v1001_v46 = vadd.f32 %v1000_v44, %v2591_v31 }
 0x3b9   : > { %1080 = vmatmul.mubr.f32.vlgmr.msra.gmra.mrb[6].mxu0 %v1001_v46  ;;  %1624 = vmatmul.mubr.f32.vlgmr.msra.gmra.mrb[6].mxu1 %v1001_v46 }
 0x48c   : > { %v1081_v47 = vpop.f32.mrb[6].mxu0  ;;  %v1152_v48 = vpop.f32.mrb[6].mxu1 }
 0x48d   : > { %v1083_v51 = vpop.f32.mrb[7].mxu0  ;;  %v1625_v52 = vpop.f32.mrb[7].mxu1  ;;  %v1082_v4 = vadd.f32 %v1081_v47, %v2526_v41  ;;  %v1153_v7 = vadd.f32 %v1152_v48, %v2532_v62 }
 0x48e   : > { %v1084_v53 = vadd.f32 %v1083_v51, %v2524_v38 }
 0x48f   : > { %v1156_v59 = vadd.f32 %v1401_v57, %v1082_v4 }
 0x490   : > { %v1169_v56 = vadd.f32 %v1402_v49, %v1084_v53 }
 0x491   : > { %v1406_v61 = vmul.f32 -1.442695, %v1156_v59 }
 0x492   : > { %v1407_v58 = vmul.f32 -1.442695, %v1169_v56 }
 0x494   : > { %1974 = vpow2.f32 %v1407_v58 }
 0x495   : > { %1976 = vpow2.f32 %v1406_v61 }
 0x49e   : > { %v1975_v63 = vpop.eup %1974 }
 0x49f   : > { %v1173_v2 = vadd.f32 1.0, %v1975_v63  ;;  %v1977_v3 = vpop.eup %1976 }
 0x4a0   : > { %v1160_v6 = vadd.f32 1.0, %v1977_v3 }
 0x4a1   : > { %1978 = vrcp.f32 %v1173_v2 }
 0x4a2   : > { %1980 = vrcp.f32 %v1160_v6 }
 0x4ab   : > { %v1979_v12 = vpop.eup %1978 }
 0x4ac   : > { %v1176_v38 = vmul.f32 %v1979_v12, %v1153_v7  ;;  %v1981_v41 = vpop.eup %1980 }
 0x4ad   : > { %v1168_v26 = vmul.f32 %v1981_v41, %v1166_v22 }
 0x4ae   : > { %v1177_v16 = vadd.f32 %v1403_v15, %v1176_v38 }
 0x4b0   : > { %1982 = vtanh.f32 %v1177_v16 }
 0x4ba   : > { %v1983_v21 = vpop.eup %1982 }
 0x4bb   : > { %v1179_v27 = vsub.f32 %v1983_v21, %v1001_v46 }
 0x4bd   : > { %v1180_v28 = vmul.f32 %v1179_v27, %v1168_v26 }
 0x4bf   : > { %v1181_v29 = vadd.f32 %v1180_v28, %v1001_v46 }
 0x4c1   : > { %v1182_v31 = vsub.f32 %v1181_v29, %v1001_v46  ;;  %v1191_v9 = vmul.f32 %v1186_v30, %v1181_v29  ;;  %1197 = sbr.rel (%p1409_p8) target bundleno = 1232 (0x4d0), region = 56 }
 0x4c3   : > { %v1188_v10 = vmul.f32 %v1186_v30, %v1182_v31  ;;  %1408 = vst [vmem:[%s2386_s18 + $0x18] sm:$0xff] %v1191_v9 }
 0x4c5   : > { %v1189_v62 = vadd.f32 %v1188_v10, %v1001_v46 }
 0x4c7   : > { %1190 = vst [vmem:[#allocation2] sm:$0xff] %v1189_v62 }
 0x4ce   : > { %v1198_v11 = vld [vmem:[#allocation2] sm:$0xff] }
 0x4cf   : > { %1199 = vst [vmem:[#allocation9] sm:$0xff] %v1198_v11 }
 0x4d0 PF: > { %s1417_s10 = sshll.u32 %s2150_s24, 9  ;;  %s1215_s15 = sshll.u32 %s2386_s18, 4  ;;  %s2654_s15 = int_to_ptr.vmem [resolvable:$true] %s1215_s15 }
 0x4d1   : > { %s2651_s14 = scalar_lea.hbm %s2730_s5, %s1417_s10  ;;  %s1201_s16 = scalar_lea.sflag [#allocation5], %s2360_s27 }
 0x4d2   : > { %s2042_s11 = scalar_lea.vmem %s2654_s15, 512  ;;  %s2169_s7 = smov [#allocation8]  }
 0x4d3   : > { %p2043_p12 = scmp.ne.s32.totalorder %s2654_s15, %s2042_s11  ;;  %s2046_s12 = sshll.u32 %s2169_s7, 4  ;;  %s2047_s12 = int_to_ptr.vmem [resolvable:$false] %s2046_s12 }
 0x4d4   : > { %s2048_s24 = scalar_lea.vmem %s2047_s12, 1024  ;;  %p2049_p5 = scmp.lt.s32.totalorder %s2654_s15, %s2047_s12 }
 0x4d5   : > { %p2044_p13 = pnand %p2043_p12, %p2303_p10  ;;  %p2050_p9 = scmp.lt.s32.totalorder %s2048_s24, %s2042_s11 }
 0x4d7   : > { %p2045_p0 = pneg %p2044_p13  ;;  %p2051_p1 = por %p2050_p9, %p2049_p5 }
 0x4d9   : > { %p2052_p2 = pnand %p2051_p1, %p2045_p0 }
 0x4db   : > { %2055 = shalt.err (!%p2052_p2)
}
 0x4dc   : > { %s2056_s19 = scalar_lea.hbm %s2651_s14, 512  ;;  %s2060_s28 = scalar_lea.hbm %s2730_s5, 1024 }
 0x4dd   : > { %p2057_p3 = scmp.ne.s32.totalorder %s2651_s14, %s2056_s19  ;;  %p2061_p4 = scmp.lt.u32.totalorder %s2651_s14, %s2730_s5 }
 0x4de   : > { %p2062_p6 = scmp.lt.u32.totalorder %s2060_s28, %s2056_s19  ;;  %p2064_p12 = scmp.lt.u32.totalorder %s2056_s19, %s2651_s14 }
 0x4df   : > { %p2058_p7 = pnand %p2057_p3, %p2303_p10 }
 0x4e0   : > { %p2063_p8 = por %p2062_p6, %p2061_p4 }
 0x4e1   : > { %p2059_p11 = pneg %p2058_p7 }
 0x4e2   : > { %p2065_p13 = por %p2064_p12, %p2063_p8 }
 0x4e4   : > { %p2066_p0 = pnand %p2065_p13, %p2059_p11 }
 0x4e6   : > { %2069 = shalt.err (!%p2066_p0)
}
 0x4e7   : > { %s2170_s9 = smov 128   ;;  %s2171_s11 = smov 8  }
 0x4e8   : > { %1859 = dma.vmem_to_hbm [thread:$0]  (%p2303_p10), %s2654_s15, 512, %s2651_s14, %s1201_s16, %s2170_s9, %s2170_s9, %s2171_s11  }
 0x4e9   : > { %s2172_s7 = smov [#allocation9]   ;;  %p2755_p9 = scmp.ne.s32.totalorder %s2741_s30, 0 }
 0x4ea   : > { %s1231_s12 = sshll.u32 %s2172_s7, 4  ;;  %s1232_s12 = int_to_ptr.vmem [resolvable:$true] %s1231_s12 }
 0x4eb   : > { %s2070_s24 = scalar_lea.vmem %s1232_s12, 128  ;;  %p2077_p3 = scmp.lt.s32.totalorder %s1232_s12, %s1232_s12 }
 0x4ec   : > { %p2071_p5 = scmp.ne.s32.totalorder %s1232_s12, %s2070_s24  ;;  %p2078_p7 = scmp.lt.s32.totalorder %s2070_s24, %s2070_s24 }
 0x4ee   : > { %p2072_p1 = pnand %p2071_p5, %p2755_p9  ;;  %p2079_p11 = por %p2078_p7, %p2077_p3 }
 0x4f0   : > { %p2073_p2 = pneg %p2072_p1 }
 0x4f2   : > { %p2080_p4 = pnand %p2079_p11, %p2073_p2 }
 0x4f4   : > { %2083 = shalt.err (!%p2080_p4)
}
 0x4f5   : > { %s2084_s17 = scalar_lea.hbm %s2731_s6, 128 }
 0x4f6   : > { %p2085_p10 = scmp.ne.s32.totalorder %s2731_s6, %s2084_s17  ;;  %p2090_p12 = scmp.lt.u32.totalorder %s2084_s17, %s2731_s6 }
 0x4f8   : > { %p2086_p6 = pnand %p2085_p10, %p2755_p9 }
 0x4fa   : > { %p2087_p8 = pneg %p2086_p6 }
 0x4fc   : > { %p2092_p13 = pnand %p2090_p12, %p2087_p8 }
 0x4fe   : > { %2095 = shalt.err (!%p2092_p13)
}
 0x4ff   : > { %1861 = dma.vmem_to_hbm [thread:$0]  (%p2755_p9), %s1232_s12, 128, %s2731_s6, [#allocation10]  }
 0x500   : > { %2129 = dma.done.wait (%p2755_p9), [#allocation10], 128  }
 0x501   : > { %2131 = vsyncadd (%p2755_p9), [#allocation10], 4294967168 }
 0x502 PF: > { %s1247_s10 = sand.u32 1, %s2138_s21   ;;  %p2756_p0 = scmp.ne.s32.totalorder %s2743_s8, 0 }
 0x503   : > { %p2757_p5 = scmp.ge.s32.totalorder %s2158_s26, 2  ;;  %s1248_s3 = scalar_lea.sflag [#allocation5], %s1247_s10 }
 0x505   : > { %p1874_p1 = pnand %p2757_p5, %p2756_p0 }
 0x507   : > { %2133 = dma.done.wait (!%p1874_p1), %s1248_s3, 512  }
 0x508   : > { %2135 = vsyncadd (!%p1874_p1), %s1248_s3, 4294966784  ;;  %s25_s26 = sadd.s32 1, %s2158_s26   ;;  %s2758_s21 = smov %s2142_s22 }
 0x509   : > { %p22_p2 = scmp.ge.s32.totalorder %s25_s26, 4   ;;  %s2759_s22 = smov %s2146_s23 }
 0x50a   : > { %s2760_s23 = smov %s2312_s20  ;;  %s2761_s24 = smov %s2154_s25 }
 0x50b   : > { %s2762_s25 = smov %s2764_s13  ;;  %24 = sbr.rel (!%p22_p2) target bundleno = 10 (0xa), region = 124 }
 0x512   :  { %1253 = vsyncpa [#allocation4], 1 }
 0x513   :  { %1255 = vsyncpa [#allocation4 + $0x1], 1 }
 0x514   :  { %1256 = vsyncpa [#allocation7], 1 }
 0x515   :  { %1257 = vsyncpa [#allocation5], 1 }
 0x516   :  { %1259 = vsyncpa [#allocation5 + $0x1], 1 }
 0x517   :  { %1260 = vsyncpa [#allocation10], 1 }

</bundles_post_ra>
